<compile_context>
chip_gen: v6e
topology: v6e:2x2x1
jax: 0.10.0
libtpu: 0.0.40
codegen_flags: <defaults>
</compile_context>

<pallas_src>
import functools

import jax
import jax.numpy as jnp
from jax import lax
from jax.experimental import pallas as pl
from jax.experimental.pallas import tpu as pltpu


def _gap_kernel_single(x_ref, o_ref, *, inv_hw):
    """Whole spatial extent in one block: reduce and write out directly."""
    x = x_ref[...].astype(jnp.float32)  # (tm, hw)
    o_ref[...] = (jnp.sum(x, axis=-1, keepdims=True) * inv_hw).astype(o_ref.dtype)


def _gap_kernel_multi(x_ref, o_ref, acc_ref, *, hw, tk, inv_hw, mask_last):
    """Row-tiled spatial reduction with an f32 accumulator resident across k.

    Grid is (row_tiles, hw_tiles); the reduction axis is LAST so the (tm, 1)
    output block and accumulator stay resident across it. Only the last
    (possibly ragged) reduction block pays for masking.
    """
    k = pl.program_id(1)
    last = pl.num_programs(1) - 1

    @pl.when(k == 0)
    def _():
        acc_ref[...] = jnp.zeros_like(acc_ref)

    if mask_last:
        @pl.when(k == last)
        def _():
            x = x_ref[...].astype(jnp.float32)  # (tm, tk)
            col = k * tk + lax.broadcasted_iota(jnp.int32, x.shape, dimension=1)
            x = jnp.where(col < hw, x, 0.0)  # padded lanes must not contribute
            acc_ref[...] += jnp.sum(x, axis=-1, keepdims=True)

        @pl.when(k != last)
        def _():
            x = x_ref[...].astype(jnp.float32)
            acc_ref[...] += jnp.sum(x, axis=-1, keepdims=True)
    else:
        x = x_ref[...].astype(jnp.float32)
        acc_ref[...] += jnp.sum(x, axis=-1, keepdims=True)

    @pl.when(k == last)
    def _():
        o_ref[...] = (acc_ref[...] * inv_hw).astype(o_ref.dtype)


def global_avg_pool_2d(x: jax.Array, *, block_bytes: int = 4 * 1024 * 1024) -> jax.Array:
    """Global average pool over spatial dims of an NCHW tensor -> (N, C)."""
    n, c, h, w = x.shape
    rows = n * c
    hw = h * w

    # Free, contiguous view for NCHW input: rows on sublanes, flattened
    # spatial extent on the 128-wide lane axis (dense vregs, dense DMAs).
    x2 = x.reshape(rows, hw)

    itemsize = jnp.dtype(x.dtype).itemsize
    sub = max(8, 32 // itemsize)  # sublane multiple: 8 f32, 16 bf16, 32 int8/fp8

    # --- Tile selection from a byte budget (HBM-bandwidth-bound kernel). ---
    if hw * itemsize * sub <= block_bytes:
        # Whole spatial extent fits in one reduction block.
        tk = hw
        tm = max(sub, (block_bytes // (hw * itemsize)) // sub * sub)
    else:
        # Tile the reduction axis; 128-aligned so only the last block is ragged.
        tm = sub
        tk = max(128, (block_bytes // (tm * itemsize)) // 128 * 128)

    if tm >= rows:
        tm = rows  # full extent satisfies the (8,128)/full rule
    elif rows >= 2 * sub:
        # Guarantee >= 2 row tiles so v7x can shard the parallel axis over 2 TCs.
        half = -(-rows // 2)
        half = -(-half // sub) * sub
        tm = min(tm, half)

    kt = pl.cdiv(hw, tk)
    mask_last = (hw % tk) != 0
    inv_hw = 1.0 / float(hw)

    if kt == 1:
        grid = (pl.cdiv(rows, tm),)
        kernel = functools.partial(_gap_kernel_single, inv_hw=inv_hw)
        in_specs = [pl.BlockSpec((tm, tk), lambda i: (i, 0))]
        out_specs = pl.BlockSpec((tm, 1), lambda i: (i, 0))
        scratch = []
        semantics = ("parallel",)
    else:
        grid = (pl.cdiv(rows, tm), kt)
        kernel = functools.partial(
            _gap_kernel_multi, hw=hw, tk=tk, inv_hw=inv_hw, mask_last=mask_last
        )
        in_specs = [pl.BlockSpec((tm, tk), lambda i, k: (i, k))]
        out_specs = pl.BlockSpec((tm, 1), lambda i, k: (i, 0))
        scratch = [pltpu.VMEM((tm, 1), jnp.float32)]
        semantics = ("parallel", "arbitrary")

    out = pl.pallas_call(
        kernel,
        out_shape=jax.ShapeDtypeStruct((rows, 1), x.dtype),
        grid_spec=pltpu.PrefetchScalarGridSpec(
            num_scalar_prefetch=0,
            grid=grid,
            in_specs=in_specs,
            out_specs=out_specs,
            scratch_shapes=scratch,
        ),
        compiler_params=pltpu.CompilerParams(
            dimension_semantics=semantics,
            # 2 x 4 MiB input buffers + tiny out/acc << 32 MiB; explicit limit so
            # v5e's 16 MiB scoped default never constrains the block budget, and
            # still safely under v7x's 64 MiB physical VMEM.
            vmem_limit_bytes=32 * 1024 * 1024,
        ),
    )(x2)

    return out.reshape(n, c)


if __name__ == "__main__":
    key = jax.random.PRNGKey(0)
    x = jax.random.normal(key, (2, 4, 16, 16), dtype=jnp.float32)

    out = global_avg_pool_2d(x)
    jax.block_until_ready(out)

    # Reference check (same semantics as the PyTorch module).
    ref = jnp.mean(x.reshape(x.shape[0], x.shape[1], -1), axis=2)
    assert out.shape == (2, 4)
    assert jnp.allclose(out, ref, atol=1e-5, rtol=1e-5)

    print("KERNEL_OK")
</pallas_src>

<mosaic_0001>
module attributes {stable_mosaic.version = 11 : i64} {
  func.func @_gap_kernel_single(%arg0: i32, %arg1: memref<8x256xf32, #tpu.memory_space<vmem>>, %arg2: memref<8x1xf32, #tpu.memory_space<vmem>>) attributes {dimension_semantics = [#tpu.dimension_semantics<parallel>], iteration_bounds = array<i64: 1>, scalar_prefetch = 0 : i64, scratch_operands = 0 : i64, tpu.core_type = #tpu.core_type<tc>, window_params = [{transform_indices = @transform_0, window_bounds = array<i64: 8, 256>}, {transform_indices = @transform_1, window_bounds = array<i64: 8, 1>}]} {
    %c0 = arith.constant 0 : index
    %c0_0 = arith.constant 0 : index
    %0 = vector.load %arg1[%c0, %c0_0] : memref<8x256xf32, #tpu.memory_space<vmem>>, vector<8x256xf32>
    %cst = arith.constant dense<0.000000e+00> : vector<8xf32>
    %1 = vector.multi_reduction <add>, %0, %cst [1] : vector<8x256xf32> to vector<8xf32>
    %2 = vector.shape_cast %1 : vector<8xf32> to vector<8x1xf32>
    %cst_1 = arith.constant 3.906250e-03 : f32
    %3 = vector.broadcast %cst_1 : f32 to vector<8x1xf32>
    %4 = arith.mulf %2, %3 : vector<8x1xf32>
    %c0_2 = arith.constant 0 : index
    %c0_3 = arith.constant 0 : index
    %5 = vector.load %arg2[%c0_2, %c0_3] : memref<8x1xf32, #tpu.memory_space<vmem>>, vector<8x1xf32>
    tpu.vector_store %arg2[%c0_2, %c0_3], %4 {strides = array<i32>} : memref<8x1xf32, #tpu.memory_space<vmem>>, vector<8x1xf32>,
    return
  }
  func.func @transform_0(%arg0: i32) -> (i32, i32) {
    %c0_i32 = arith.constant 0 : i32
    %c0_i32_0 = arith.constant 0 : i32
    return %arg0, %c0_i32 : i32, i32
  }
  func.func @transform_1(%arg0: i32) -> (i32, i32) {
    %c0_i32 = arith.constant 0 : i32
    %c0_i32_0 = arith.constant 0 : i32
    return %arg0, %c0_i32 : i32, i32
  }
}

</mosaic_0001>

<bundles_post_ra>
// kernel: tpu_custom_call.1
= control target key start
LH: loop header
LB: loop body
LE: loop exit
PB: predicated region body
PF: predicated region fallthrough
CT: control target
= control target key end

     0   :  { %6 = vsyncpa [#allocation3], 0  ;;  %s56_s6 = smov [#allocation2]   ;;  %s73_s0 = inlined_call_operand.hbm [shape: f32[8,256], index: 0, kind: input, shape index: {}]   ;;  %s74_s1 = inlined_call_operand.vmem [shape: f32[8,1], index: 1, kind: output, shape index: {}]  }
   0x1   :  { %s13_s7 = sshll.u32 %s56_s6, 4  ;;  %s14_s7 = int_to_ptr.vmem [resolvable:$true] %s13_s7 }
   0x2   :  { %s42_s8 = scalar_lea.vmem %s14_s7, 256  ;;  %p47_p1 = scmp.lt.s32.totalorder %s14_s7, %s14_s7 }
   0x3   :  { %p43_p0 = scmp.ne.s32.totalorder %s14_s7, %s42_s8  ;;  %p48_p2 = scmp.lt.s32.totalorder %s42_s8, %s42_s8 }
   0x5   :  { %p49_p3 = por %p48_p2, %p47_p1 }
   0x7   :  { %p50_p4 = pnand %p49_p3, %p43_p0 }
   0x9   :  { %53 = shalt.err (!%p50_p4)
}
   0xa   :  { %16 = dma.hbm_to_vmem [thread:$0]  %s73_s0, 256, %s14_s7, [#allocation3]  }
   0xb   :  { %54 = dma.done.wait [#allocation3], 256  }
   0xc   :  { %55 = vsyncadd [#allocation3], 4294967040  ;;  %v20_v0 = vld [vmem:[#allocation2] sm:$0xff]  ;;  %v21_v1 = vld [vmem:[#allocation2 + $0x8] sm:$0xff]  ;;  %vm26_vm0 = vcmask 7168  }
   0xd   :  { %v22_v2 = vadd.f32 %v21_v1, %v20_v0 }
   0xf   :  { %23 = vadd.xlane.f32.xlu0 %v22_v2 }
  0x98   :  { %v24_v3 = vpop.xlane.xlu0 %23 }
  0x99   :  { %v25_v4 = vmul.f32 0.00390625, %v24_v3 }
  0x9b   :  { %27 = vst.msk [vmem:[%s74_s1] sm:$0xff] %vm26_vm0, %v25_v4 }
  0x9c   :  { %32 = vsyncpa [#allocation3], 1 }

</bundles_post_ra>
